<compile_context>
chip_gen: v5e
topology: v5e:2x2
jax: 0.10.0
libtpu: 0.0.40
codegen_flags: <defaults>
</compile_context>

<pallas_src>
import jax
import jax.numpy as jnp
from jax.experimental import pallas as pl
from jax.experimental.pallas import tpu as pltpu


def _conv_prelu_kernel(x_ref, w_ref, b_ref, a_ref, o_ref):
    # x_ref : (1, 1, strip_rows, K) bf16  one H-strip; rows flattened as h*Wp + w,
    #         channels already hold the im2col taps (K = 9*Cin or 3*Cin).
    # w_ref : (n_dy, K, Cout_p)     bf16  per-row-tap weight slab(s), N padded to 128.
    # b_ref : (1, Cout_p)           f32   conv bias (padded).
    # a_ref : (1, Cout_p)           f32   PReLU alpha expanded to conv-out channels.
    # o_ref : (1, rows, Cout_p)     bf16  lane-dense flat output rows.
    rows = o_ref.shape[1]                       # th * Wp (static)
    n_dy = w_ref.shape[0]                       # 1 (full im2col) or 3 (row taps)
    wp = (x_ref.shape[2] - rows) // (n_dy - 1) if n_dy > 1 else 0

    # Value-form accumulation: partials stay on the MXU result path / compiler-managed
    # registers and VMEM; no explicit scratch RMW passes.
    acc = jnp.dot(x_ref[0, 0, 0:rows, :], w_ref[0],
                  preferred_element_type=jnp.float32)
    for dy in range(1, n_dy):
        # Static, 8-aligned contiguous row window -> no relayout copy.
        acc = acc + jnp.dot(x_ref[0, 0, dy * wp: dy * wp + rows, :], w_ref[dy],
                            preferred_element_type=jnp.float32)

    y = acc + b_ref[...]                         # (rows, Cout_p) f32
    y = jnp.where(y >= 0.0, y, a_ref[...] * y)   # fused PReLU
    o_ref[0] = y.astype(o_ref.dtype)             # single bf16 store


def _pick_tile_h(H, Wp, K, Cout_p, halo_rows, budget_bytes):
    """Largest strip height whose double-buffered working set fits the VMEM budget."""
    best = 1
    for th in range(1, H + 1):
        rows = th * Wp
        strip_rows = (th + halo_rows) * Wp
        need = (2 * strip_rows * K * 2          # bf16 input strips, double-buffered
                + 2 * rows * Cout_p * 2         # bf16 output blocks, double-buffered
                + 2 * rows * Cout_p * 4)        # f32 accumulator value + epilogue temp
        if need <= budget_bytes:
            best = th
        else:
            break
    return best


def upsample_block(x_nchw, w_oihw, bias, alpha, up_scale,
                   vmem_tile_budget=30 * 1024 * 1024):
    """Forward pass of UpsampleBLock (matches the PyTorch module, NCHW in / NCHW out)."""
    N, Cin, H, W = x_nchw.shape
    r = up_scale
    r2 = r * r
    Cout = Cin * r2
    assert w_oihw.shape == (Cout, Cin, 3, 3)

    # ---- geometry --------------------------------------------------------------------
    Wp = ((W + 2 + 7) // 8) * 8              # padded width, multiple of 8 (sublane aligned)
    Cout_p = ((Cout + 127) // 128) * 128     # lane-dense output channels
    # Small Cin: fold all 9 taps into K (one matmul per strip, non-overlapping strips,
    # no halo materialisation).  Large Cin: fold only kw (K = 3*Cin, 3 matmuls + halo).
    full_im2col = (3 * Cin) < 128
    n_dy = 1 if full_im2col else 3
    K = (9 if full_im2col else 3) * Cin
    halo = 0 if full_im2col else 2

    th = _pick_tile_h(H, Wp, K, Cout_p, halo, vmem_tile_budget)
    nS = -(-H // th)
    if N * nS < 2 and H >= 2:                # keep >=2 parallel steps for 2-TC chips (v7x)
        th = -(-H // 2)
        nS = -(-H // th)
    Hp = nS * th                             # H padded to a multiple of th (cdiv grid)
    rows = th * Wp
    strip_rows = (th + halo) * Wp

    # ---- input: NCHW->NHWC (bf16), zero-pad, im2col onto lanes -------------------------
    xb = jnp.transpose(x_nchw.astype(jnp.bfloat16), (0, 2, 3, 1))            # (N,H,W,Cin)
    x_pad = jnp.pad(xb, ((0, 0), (1, 1 + Hp - H), (1, Wp - W - 1), (0, 0)))  # (N,Hp+2,Wp,Cin)

    if full_im2col:
        taps = []
        for dy in range(3):
            for dx in range(3):
                t = x_pad[:, dy:dy + Hp, dx:, :]
                taps.append(jnp.pad(t, ((0, 0), (0, 0), (0, dx), (0, 0))))
        xim = jnp.concatenate(taps, axis=-1)                                  # (N,Hp,Wp,9Cin)
        x_prep = xim.reshape(N, nS, strip_rows, K)                            # pure reshape
        w_k = jnp.transpose(w_oihw.astype(jnp.bfloat16), (2, 3, 1, 0)).reshape(1, K, Cout)
    else:
        taps = [jnp.pad(x_pad[:, :, dx:, :], ((0, 0), (0, 0), (0, dx), (0, 0)))
                for dx in range(3)]
        xim = jnp.concatenate(taps, axis=-1)                                  # (N,Hp+2,Wp,3Cin)
        # TODO(synk): express the 2-row halo with an overlapping pl.Element window on the
        # H axis instead of materialising overlapping strips in HBM.
        strips = jnp.stack([xim[:, s * th: s * th + th + 2] for s in range(nS)], axis=1)
        x_prep = strips.reshape(N, nS, strip_rows, K)
        w_k = jnp.transpose(w_oihw.astype(jnp.bfloat16), (2, 3, 1, 0)).reshape(3, K, Cout)

    w_k = jnp.pad(w_k, ((0, 0), (0, 0), (0, Cout_p - Cout)))
    b2 = jnp.pad(bias.astype(jnp.float32), (0, Cout_p - Cout)).reshape(1, Cout_p)
    a2 = jnp.pad(jnp.repeat(alpha.astype(jnp.float32), r2),
                 (0, Cout_p - Cout)).reshape(1, Cout_p)

    conv_flat = pl.pallas_call(
        _conv_prelu_kernel,
        out_shape=jax.ShapeDtypeStruct((N, Hp * Wp, Cout_p), jnp.bfloat16),
        grid=(N, nS),
        in_specs=[
            pl.BlockSpec((1, 1, strip_rows, K), lambda b, s: (b, s, 0, 0)),
            pl.BlockSpec((n_dy, K, Cout_p), lambda b, s: (0, 0, 0)),
            pl.BlockSpec((1, Cout_p), lambda b, s: (0, 0)),
            pl.BlockSpec((1, Cout_p), lambda b, s: (0, 0)),
        ],
        out_specs=pl.BlockSpec((1, rows, Cout_p), lambda b, s: (b, s, 0)),
        compiler_params=pltpu.CompilerParams(
            dimension_semantics=("parallel", "parallel"),
            vmem_limit_bytes=48 * 1024 * 1024),
    )(x_prep, w_k, b2, a2)

    # ---- drop padded rows/columns/channels, pixel shuffle, back to NCHW (XLA glue) -----
    conv = conv_flat.reshape(N, Hp, Wp, Cout_p)[:, :H, :W, :Cout]            # (N,H,W,Cout) bf16
    y = conv.reshape(N, H, W, Cin, r, r)
    y = jnp.transpose(y, (0, 1, 4, 2, 5, 3)).reshape(N, H * r, W * r, Cin)
    # TODO(synk): fuse the pixel-shuffle permutation into the kernel store (ry-major
    # output channel ordering) so this pass becomes a cheap reshape.
    return jnp.transpose(y, (0, 3, 1, 2)).astype(jnp.float32)                # NCHW f32


def _reference(x_nchw, w_oihw, bias, alpha, r):
    # Pure-JAX reference (conv + pixel shuffle + PReLU) for validation.
    conv = jax.lax.conv_general_dilated(
        x_nchw, w_oihw, window_strides=(1, 1), padding=((1, 1), (1, 1)),
        dimension_numbers=("NCHW", "OIHW", "NCHW"),
        precision=jax.lax.Precision.HIGHEST)
    conv = conv + bias[None, :, None, None]
    N, Cin, H, W = x_nchw.shape
    y = conv.reshape(N, Cin, r, r, H, W)
    y = jnp.transpose(y, (0, 1, 4, 2, 5, 3)).reshape(N, Cin, H * r, W * r)
    a = alpha[None, :, None, None]
    return jnp.where(y >= 0, y, a * y)


if __name__ == "__main__":
    key = jax.random.PRNGKey(0)
    N, Cin, H, W = 2, 4, 16, 16
    r = 2
    Cout = Cin * r * r

    kx, kw, kb = jax.random.split(key, 3)
    x = jax.random.normal(kx, (N, Cin, H, W), dtype=jnp.float32)
    fan_in = Cin * 3 * 3
    w = jax.random.normal(kw, (Cout, Cin, 3, 3), dtype=jnp.float32) * (1.0 / fan_in) ** 0.5
    b = jax.random.normal(kb, (Cout,), dtype=jnp.float32) * 0.01
    alpha = jnp.full((Cin,), 0.25, dtype=jnp.float32)

    fn = jax.jit(upsample_block, static_argnums=(4,))
    out = jax.block_until_ready(fn(x, w, b, alpha, r))

    # Reference on bf16-rounded inputs (kernel uses bf16 operands / bf16 store with f32 acc).
    xr = x.astype(jnp.bfloat16).astype(jnp.float32)
    wr = w.astype(jnp.bfloat16).astype(jnp.float32)
    ref = _reference(xr, wr, b, alpha, r)

    assert out.shape == (N, Cin, H * r, W * r)
    err = float(jnp.max(jnp.abs(out - ref)))
    assert jnp.allclose(out, ref, atol=2e-2, rtol=2e-2), f"mismatch vs reference: {err}"

    print("KERNEL_OK")
</pallas_src>

<mosaic_0001>
module attributes {stable_mosaic.version = 11 : i64} {
  func.func @_conv_prelu_kernel(%arg0: i32, %arg1: i32, %arg2: memref<1x1x384x36xbf16, #tpu.memory_space<vmem>>, %arg3: memref<1x36x128xbf16, #tpu.memory_space<vmem>>, %arg4: memref<1x128xf32, #tpu.memory_space<vmem>>, %arg5: memref<1x128xf32, #tpu.memory_space<vmem>>, %arg6: memref<1x384x128xbf16, #tpu.memory_space<vmem>>) attributes {dimension_semantics = [#tpu.dimension_semantics<parallel>, #tpu.dimension_semantics<parallel>], iteration_bounds = array<i64: 2, 1>, scalar_prefetch = 0 : i64, scratch_operands = 0 : i64, tpu.core_type = #tpu.core_type<tc>, window_params = [{transform_indices = @transform_0, window_bounds = array<i64: 1, 1, 384, 36>}, {pipeline_mode = #tpu.pipeline_mode<synchronous>, transform_indices = @transform_1, window_bounds = array<i64: 1, 36, 128>}, {pipeline_mode = #tpu.pipeline_mode<synchronous>, transform_indices = @transform_2, window_bounds = array<i64: 1, 128>}, {pipeline_mode = #tpu.pipeline_mode<synchronous>, transform_indices = @transform_3, window_bounds = array<i64: 1, 128>}, {transform_indices = @transform_4, window_bounds = array<i64: 1, 384, 128>}]} {
    %c0 = arith.constant 0 : index
    %c0_0 = arith.constant 0 : index
    %c0_1 = arith.constant 0 : index
    %c0_2 = arith.constant 0 : index
    %0 = vector.load %arg2[%c0, %c0_0, %c0_1, %c0_2] : memref<1x1x384x36xbf16, #tpu.memory_space<vmem>>, vector<1x1x384x36xbf16>
    %1 = vector.shape_cast %0 : vector<1x1x384x36xbf16> to vector<384x36xbf16>
    %c0_3 = arith.constant 0 : index
    %c0_4 = arith.constant 0 : index
    %c0_5 = arith.constant 0 : index
    %2 = vector.load %arg3[%c0_3, %c0_4, %c0_5] : memref<1x36x128xbf16, #tpu.memory_space<vmem>>, vector<1x36x128xbf16>
    %3 = vector.shape_cast %2 : vector<1x36x128xbf16> to vector<36x128xbf16>
    %cst = arith.constant dense<0.000000e+00> : vector<384x128xf32>
    %4 = tpu.matmul %1, %3, %cst {dimension_numbers = #tpu.dot_dimension_numbers<[1], [0], [0], [1], [0, 0, 1, 1], [], []>} : vector<384x36xbf16>, vector<36x128xbf16>, vector<384x128xf32> -> vector<384x128xf32>
    %c0_6 = arith.constant 0 : index
    %c0_7 = arith.constant 0 : index
    %5 = vector.load %arg4[%c0_6, %c0_7] : memref<1x128xf32, #tpu.memory_space<vmem>>, vector<1x128xf32>
    %6 = vector.broadcast %5 : vector<1x128xf32> to vector<384x128xf32>
    %7 = arith.addf %4, %6 : vector<384x128xf32>
    %cst_8 = arith.constant 0.000000e+00 : f32
    %8 = vector.broadcast %cst_8 : f32 to vector<384x128xf32>
    %9 = arith.cmpf oge, %7, %8 : vector<384x128xf32>
    %c0_9 = arith.constant 0 : index
    %c0_10 = arith.constant 0 : index
    %10 = vector.load %arg5[%c0_9, %c0_10] : memref<1x128xf32, #tpu.memory_space<vmem>>, vector<1x128xf32>
    %11 = vector.broadcast %10 : vector<1x128xf32> to vector<384x128xf32>
    %12 = arith.mulf %11, %7 : vector<384x128xf32>
    %13 = arith.select %9, %7, %12 : vector<384x128xi1>, vector<384x128xf32>
    %14 = arith.truncf %13 : vector<384x128xf32> to vector<384x128xbf16>
    %c0_11 = arith.constant 0 : index
    %c0_12 = arith.constant 0 : index
    %c0_13 = arith.constant 0 : index
    %15 = vector.load %arg6[%c0_11, %c0_12, %c0_13] : memref<1x384x128xbf16, #tpu.memory_space<vmem>>, vector<1x384x128xbf16>
    %16 = vector.shape_cast %15 : vector<1x384x128xbf16> to vector<384x128xbf16>
    %17 = vector.shape_cast %14 : vector<384x128xbf16> to vector<1x384x128xbf16>
    tpu.vector_store %arg6[%c0_11, %c0_12, %c0_13], %17 {strides = array<i32>} : memref<1x384x128xbf16, #tpu.memory_space<vmem>>, vector<1x384x128xbf16>,
    return
  }
  func.func @transform_0(%arg0: i32, %arg1: i32) -> (i32, i32, i32, i32) {
    %c0_i32 = arith.constant 0 : i32
    %c0_i32_0 = arith.constant 0 : i32
    %c0_i32_1 = arith.constant 0 : i32
    return %arg0, %arg1, %c0_i32, %c0_i32_0 : i32, i32, i32, i32
  }
  func.func @transform_1(%arg0: i32, %arg1: i32) -> (i32, i32, i32) {
    %c0_i32 = arith.constant 0 : i32
    %c0_i32_0 = arith.constant 0 : i32
    %c0_i32_1 = arith.constant 0 : i32
    %c0_i32_2 = arith.constant 0 : i32
    return %c0_i32, %c0_i32_0, %c0_i32_1 : i32, i32, i32
  }
  func.func @transform_2(%arg0: i32, %arg1: i32) -> (i32, i32) {
    %c0_i32 = arith.constant 0 : i32
    %c0_i32_0 = arith.constant 0 : i32
    %c0_i32_1 = arith.constant 0 : i32
    return %c0_i32, %c0_i32_0 : i32, i32
  }
  func.func @transform_3(%arg0: i32, %arg1: i32) -> (i32, i32) {
    %c0_i32 = arith.constant 0 : i32
    %c0_i32_0 = arith.constant 0 : i32
    %c0_i32_1 = arith.constant 0 : i32
    return %c0_i32, %c0_i32_0 : i32, i32
  }
  func.func @transform_4(%arg0: i32, %arg1: i32) -> (i32, i32, i32) {
    %c0_i32 = arith.constant 0 : i32
    %c0_i32_0 = arith.constant 0 : i32
    return %arg0, %arg1, %c0_i32 : i32, i32, i32
  }
}

</mosaic_0001>

<bundles_post_ra>
// kernel: upsample_block.1
= control target key start
LH: loop header
LB: loop body
LE: loop exit
PB: predicated region body
PF: predicated region fallthrough
CT: control target
= control target key end

     0   :  { %s1359_s15 = smov 0   ;;  %s1361_s16 = smov 0   ;;  %s1590_s0 = inlined_call_operand.vmem [shape: bf16[2,1,384,36], index: 0, kind: input, shape index: {}]   ;;  %s1591_s1 = inlined_call_operand.vmem [shape: bf16[1,36,128], index: 1, kind: input, shape index: {}]   ;;  %s1592_s2 = inlined_call_operand.vmem [shape: f32[1,128], index: 2, kind: input, shape index: {}]   ;;  %s1593_s3 = inlined_call_operand.vmem [shape: f32[1,128], index: 3, kind: input, shape index: {}]   ;;  %s1594_s4 = inlined_call_operand.vmem [shape: bf16[2,384,128], index: 4, kind: output, shape index: {}]  }
   0x1   :  { %s1363_s17 = smov 0  }
   0x2 LB: > { %s26_s18 = sadd.s32 1, %s1328_s16  ;;  %p972_p0 = scmp.ge.s32.totalorder %s1332_s17, 1  ;;  %s1332_s17 = sphi %s1363_s17, %s14_s17   ;;  %s1328_s16 = sphi %s1361_s16, %s1596_s16   ;;  %s1324_s15 = sphi %s1359_s15, %s1595_s15  }
   0x3   : > { %p28_p1 = scmp.ge.s32.totalorder %s26_s18, 2  ;;  %p182_p2 = scmp.lt.s32.totalorder %s1332_s17, 3 }
   0x5   : > { %s1598_s18 = smov (%p28_p1, %s26_s18), 0  ;;  %p183_p3 = pnand %p972_p0, %p182_p2 }
   0x6   : > { %p216_p4 = scmp.lt.s32.totalorder (!%p183_p3), %s1324_s15, 1 }
   0x7   : > { %186 = sbr.rel (%p183_p3) target bundleno = 259 (0x103), region = 36 }
   0xc   : > { %v288_v0 = vld [vmem:[%s1591_s1 + $0x10] sm:$0x3]  ;;  %vm501_vm0 = vcmask 1041408   ;;  %s1600_s15 = smov (!%p216_p4, %s1324_s15), 1  ;;  %v1130_v4 = vld [vmem:[%s1591_s1 + $0x8] sm:$0xff]  ;;  %v1129_v5 = vld [vmem:[%s1591_s1] sm:$0xff] }
   0xd   : > { %v422_v1 = vunpack.c.l.b16 %v288_v0  ;;  %s1283_s23 = smul.u32 192, %s1600_s15  ;;  %vm428_vm1 = vcmask 293888   ;;  %v1447_v32 = vld [vmem:[%s1592_s2] ss:$0 sm:$0xff] }
   0xe   : > { %v1453_v34 = vld [vmem:[%s1593_s3] ss:$0 sm:$0xff] }
   0xf   : > { %v425_v2 = vpack.c.b16 %v422_v1, %v422_v1  ;;  %s1394_s28 = scalar_lea.vmem %s1590_s0, %s1283_s23  ;;  %s1469_s9 = scalar_lea.vmem %s1594_s4, %s1283_s23 }
  0x10   : > { %v1105_v6 = vld [vmem:[%s1394_s28] sm:$0xff]  ;;  %v1111_v7 = vld [vmem:[%s1394_s28 + $0x30] sm:$0xff]  ;;  %v1106_v10 = vld [vmem:[%s1394_s28 + $0x8] sm:$0xff] }
  0x11   : > { %v503_v3 = vsel %vm501_vm0, %v425_v2, 0  ;;  %v1117_v8 = vld [vmem:[%s1394_s28 + $0x60] sm:$0xff]  ;;  %v1123_v9 = vld [vmem:[%s1394_s28 + $0x90] sm:$0xff]  ;;  %v1112_v11 = vld [vmem:[%s1394_s28 + $0x38] sm:$0xff] }
  0x12   : > { %510 = vmatpush.bf16.msra.mxu0 %v503_v3  ;;  %1274 = vmatpush.bf16.msra.mxu1 %v503_v3  ;;  %v1118_v12 = vld [vmem:[%s1394_s28 + $0x68] sm:$0xff]  ;;  %v1124_v13 = vld [vmem:[%s1394_s28 + $0x98] sm:$0xff]  ;;  %v1107_v14 = vld [vmem:[%s1394_s28 + $0x10] sm:$0xff] }
  0x13   : > { %1275 = vmatpush.bf16.msra.mxu2 %v503_v3  ;;  %1276 = vmatpush.bf16.msra.mxu3 %v503_v3  ;;  %v1113_v15 = vld [vmem:[%s1394_s28 + $0x40] sm:$0xff]  ;;  %v1119_v16 = vld [vmem:[%s1394_s28 + $0x70] sm:$0xff]  ;;  %v1108_v18 = vld [vmem:[%s1394_s28 + $0x18] sm:$0xff] }
  0x14   : > { %v1125_v17 = vld [vmem:[%s1394_s28 + $0xa0] sm:$0xff]  ;;  %v1114_v19 = vld [vmem:[%s1394_s28 + $0x48] sm:$0xff]  ;;  %v1120_v20 = vld [vmem:[%s1394_s28 + $0x78] sm:$0xff] }
  0x15   : > { %v1126_v21 = vld [vmem:[%s1394_s28 + $0xa8] sm:$0xff]  ;;  %v1109_v22 = vld [vmem:[%s1394_s28 + $0x20] sm:$0xff]  ;;  %v1115_v23 = vld [vmem:[%s1394_s28 + $0x50] sm:$0xff] }
  0x16   : > { %511 = vmatpush.bf16.msra.mxu0 %v1130_v4  ;;  %1277 = vmatpush.bf16.msra.mxu1 %v1130_v4  ;;  %v1121_v24 = vld [vmem:[%s1394_s28 + $0x80] sm:$0xff]  ;;  %v1127_v25 = vld [vmem:[%s1394_s28 + $0xb0] sm:$0xff]  ;;  %v1110_v26 = vld [vmem:[%s1394_s28 + $0x28] sm:$0xff] }
  0x17   : > { %1278 = vmatpush.bf16.msra.mxu2 %v1130_v4  ;;  %1279 = vmatpush.bf16.msra.mxu3 %v1130_v4  ;;  %v1116_v27 = vld [vmem:[%s1394_s28 + $0x58] sm:$0xff]  ;;  %v1122_v28 = vld [vmem:[%s1394_s28 + $0x88] sm:$0xff] }
  0x18   : > { %v1128_v29 = vld [vmem:[%s1394_s28 + $0xb8] sm:$0xff] }
  0x1a   : > { %512 = vmatpush.bf16.msra.mxu0 %v1129_v5  ;;  %1280 = vmatpush.bf16.msra.mxu1 %v1129_v5 }
  0x1b   : > { %1281 = vmatpush.bf16.msra.mxu2 %v1129_v5  ;;  %1282 = vmatpush.bf16.msra.mxu3 %v1129_v5 }
  0x1d   : > { %1079 = vmatmul.msk.bf16.vlgmr.msra.gmra.mxu0 %vm428_vm1, %v1105_v6  ;;  %1085 = vmatmul.msk.bf16.vlgmr.msra.gmra.mxu1 %vm428_vm1, %v1111_v7 }
  0x1e   : > { %1091 = vmatmul.msk.bf16.vlgmr.msra.gmra.mxu2 %vm428_vm1, %v1117_v8  ;;  %1097 = vmatmul.msk.bf16.vlgmr.msra.gmra.mxu3 %vm428_vm1, %v1123_v9 }
  0x2d   : > { %1080 = vmatmul.msk.bf16.gmra.mxu0 %vm428_vm1, %v1106_v10  ;;  %1086 = vmatmul.msk.bf16.gmra.mxu1 %vm428_vm1, %v1112_v11 }
  0x2e   : > { %1092 = vmatmul.msk.bf16.gmra.mxu2 %vm428_vm1, %v1118_v12  ;;  %1098 = vmatmul.msk.bf16.gmra.mxu3 %vm428_vm1, %v1124_v13 }
  0x3d   : > { %1081 = vmatmul.msk.bf16.gmra.mxu0 %vm428_vm1, %v1107_v14  ;;  %1087 = vmatmul.msk.bf16.gmra.mxu1 %vm428_vm1, %v1113_v15 }
  0x3e   : > { %1093 = vmatmul.msk.bf16.gmra.mxu2 %vm428_vm1, %v1119_v16  ;;  %1099 = vmatmul.msk.bf16.gmra.mxu3 %vm428_vm1, %v1125_v17 }
  0x4d   : > { %1082 = vmatmul.msk.bf16.gmra.mxu0 %vm428_vm1, %v1108_v18  ;;  %1088 = vmatmul.msk.bf16.gmra.mxu1 %vm428_vm1, %v1114_v19 }
  0x4e   : > { %1094 = vmatmul.msk.bf16.gmra.mxu2 %vm428_vm1, %v1120_v20  ;;  %1100 = vmatmul.msk.bf16.gmra.mxu3 %vm428_vm1, %v1126_v21 }
  0x5d   : > { %1083 = vmatmul.msk.bf16.gmra.mxu0 %vm428_vm1, %v1109_v22  ;;  %1089 = vmatmul.msk.bf16.gmra.mxu1 %vm428_vm1, %v1115_v23 }
  0x5e   : > { %1095 = vmatmul.msk.bf16.gmra.mxu2 %vm428_vm1, %v1121_v24  ;;  %1101 = vmatmul.msk.bf16.gmra.mxu3 %vm428_vm1, %v1127_v25 }
  0x6d   : > { %1084 = vmatmul.msk.bf16.gmra.mxu0 %vm428_vm1, %v1110_v26  ;;  %1090 = vmatmul.msk.bf16.gmra.mxu1 %vm428_vm1, %v1116_v27 }
  0x6e   : > { %1096 = vmatmul.msk.bf16.gmra.mxu2 %vm428_vm1, %v1122_v28  ;;  %1102 = vmatmul.msk.bf16.gmra.mxu3 %vm428_vm1, %v1128_v29 }
  0x9a   : > { %v514_v30 = vpop.f32.mrf.mxu0  ;;  %v544_v31 = vpop.f32.mrf.mxu1 }
  0x9b   : > { %v515_v33 = vadd.f32 %v1447_v32, %v514_v30  ;;  %v545_v35 = vadd.f32 %v1447_v32, %v544_v31 }
  0x9d   : > { %v686_v40 = vmul.f32 %v1453_v34, %v515_v33  ;;  %v698_v41 = vmul.f32 %v1453_v34, %v545_v35  ;;  %vm634_vm2 = vcmp.ge.f32.partialorder %v515_v33, 0.0  ;;  %vm646_vm3 = vcmp.ge.f32.partialorder %v545_v35, 0.0 }
  0x9f   : > { %v734_v48 = vsel %vm634_vm2, %v515_v33, %v686_v40  ;;  %v746_v49 = vsel %vm646_vm3, %v545_v35, %v698_v41 }
  0xa1   : > { %v574_v36 = vpop.f32.mrf.mxu2  ;;  %v604_v37 = vpop.f32.mrf.mxu3 }
  0xa2   : > { %v516_v38 = vpop.f32.mrf.mxu0  ;;  %v546_v39 = vpop.f32.mrf.mxu1  ;;  %v575_v46 = vadd.f32 %v1447_v32, %v574_v36  ;;  %v605_v47 = vadd.f32 %v1447_v32, %v604_v37 }
  0xa3   : > { %v517_v42 = vadd.f32 %v1447_v32, %v516_v38  ;;  %v547_v43 = vadd.f32 %v1447_v32, %v546_v39 }
  0xa4   : > { %v710_v56 = vmul.f32 %v1453_v34, %v575_v46  ;;  %v722_v57 = vmul.f32 %v1453_v34, %v605_v47  ;;  %vm658_vm6 = vcmp.ge.f32.partialorder %v575_v46, 0.0  ;;  %vm670_vm7 = vcmp.ge.f32.partialorder %v605_v47, 0.0 }
  0xa5   : > { %vm635_vm4 = vcmp.ge.f32.partialorder %v517_v42, 0.0  ;;  %v687_v44 = vmul.f32 %v1453_v34, %v517_v42  ;;  %vm647_vm5 = vcmp.ge.f32.partialorder %v547_v43, 0.0  ;;  %v699_v45 = vmul.f32 %v1453_v34, %v547_v43 }
  0xa6   : > { %v758_v0 = vsel %vm658_vm6, %v575_v46, %v710_v56  ;;  %v770_v1 = vsel %vm670_vm7, %v605_v47, %v722_v57 }
  0xa7   : > { %v735_v50 = vsel %vm635_vm4, %v517_v42, %v687_v44  ;;  %v747_v51 = vsel %vm647_vm5, %v547_v43, %v699_v45 }
  0xa8   : > { %v1134_v52 = vpack.c.bf16 %v735_v50, %v734_v48  ;;  %v1164_v53 = vpack.c.bf16 %v747_v51, %v746_v49 }
  0xa9   : > { %v576_v54 = vpop.f32.mrf.mxu2  ;;  %v606_v55 = vpop.f32.mrf.mxu3 }
  0xaa   : > { %1135 = vst [vmem:[%s1469_s9] sm:$0xff] %v1134_v52   ;;  %v577_v58 = vadd.f32 %v1447_v32, %v576_v54  ;;  %v607_v59 = vadd.f32 %v1447_v32, %v606_v55  ;;  %v519_v60 = vpop.f32.mrf.mxu0  ;;  %v549_v61 = vpop.f32.mrf.mxu1 }
  0xab   : > { %1256 = vst [vmem:[%s1469_s9 + $0x30] sm:$0xff] %v1164_v53   ;;  %v520_v6 = vadd.f32 %v1447_v32, %v519_v60  ;;  %v550_v7 = vadd.f32 %v1447_v32, %v549_v61 }
  0xac   : > { %vm659_vm8 = vcmp.ge.f32.partialorder %v577_v58, 0.0  ;;  %v711_v62 = vmul.f32 %v1453_v34, %v577_v58  ;;  %vm671_vm9 = vcmp.ge.f32.partialorder %v607_v59, 0.0  ;;  %v723_v63 = vmul.f32 %v1453_v34, %v607_v59 }
  0xad   : > { %v688_v12 = vmul.f32 %v1453_v34, %v520_v6  ;;  %v700_v13 = vmul.f32 %v1453_v34, %v550_v7  ;;  %vm636_vm10 = vcmp.ge.f32.partialorder %v520_v6, 0.0  ;;  %vm648_vm11 = vcmp.ge.f32.partialorder %v550_v7, 0.0 }
  0xae   : > { %v759_v2 = vsel %vm659_vm8, %v577_v58, %v711_v62  ;;  %v771_v3 = vsel %vm671_vm9, %v607_v59, %v723_v63 }
  0xaf   : > { %v1194_v4 = vpack.c.bf16 %v759_v2, %v758_v0  ;;  %v1224_v5 = vpack.c.bf16 %v771_v3, %v770_v1  ;;  %v736_v20 = vsel %vm636_vm10, %v520_v6, %v688_v12  ;;  %v748_v21 = vsel %vm648_vm11, %v550_v7, %v700_v13 }
  0xb1   : > { %1262 = vst [vmem:[%s1469_s9 + $0x60] sm:$0xff] %v1194_v4   ;;  %v579_v8 = vpop.f32.mrf.mxu2  ;;  %v609_v9 = vpop.f32.mrf.mxu3 }
  0xb2   : > { %1268 = vst [vmem:[%s1469_s9 + $0x90] sm:$0xff] %v1224_v5   ;;  %v521_v10 = vpop.f32.mrf.mxu0  ;;  %v551_v11 = vpop.f32.mrf.mxu1  ;;  %v580_v18 = vadd.f32 %v1447_v32, %v579_v8  ;;  %v610_v19 = vadd.f32 %v1447_v32, %v609_v9 }
  0xb3   : > { %v522_v14 = vadd.f32 %v1447_v32, %v521_v10  ;;  %v552_v15 = vadd.f32 %v1447_v32, %v551_v11 }
  0xb4   : > { %v712_v28 = vmul.f32 %v1453_v34, %v580_v18  ;;  %v724_v29 = vmul.f32 %v1453_v34, %v610_v19  ;;  %vm660_vm14 = vcmp.ge.f32.partialorder %v580_v18, 0.0  ;;  %vm672_vm15 = vcmp.ge.f32.partialorder %v610_v19, 0.0 }
  0xb5   : > { %vm637_vm12 = vcmp.ge.f32.partialorder %v522_v14, 0.0  ;;  %v689_v16 = vmul.f32 %v1453_v34, %v522_v14  ;;  %vm649_vm13 = vcmp.ge.f32.partialorder %v552_v15, 0.0  ;;  %v701_v17 = vmul.f32 %v1453_v34, %v552_v15 }
  0xb6   : > { %v760_v38 = vsel %vm660_vm14, %v580_v18, %v712_v28  ;;  %v772_v39 = vsel %vm672_vm15, %v610_v19, %v724_v29 }
  0xb7   : > { %v737_v22 = vsel %vm637_vm12, %v522_v14, %v689_v16  ;;  %v749_v23 = vsel %vm649_vm13, %v552_v15, %v701_v17 }
  0xb8   : > { %v1139_v24 = vpack.c.bf16 %v737_v22, %v736_v20  ;;  %v1169_v25 = vpack.c.bf16 %v749_v23, %v748_v21 }
  0xb9   : > { %v581_v26 = vpop.f32.mrf.mxu2  ;;  %v611_v27 = vpop.f32.mrf.mxu3 }
  0xba   : > { %1251 = vst [vmem:[%s1469_s9 + $0x8] sm:$0xff] %v1139_v24   ;;  %v582_v30 = vadd.f32 %v1447_v32, %v581_v26  ;;  %v612_v31 = vadd.f32 %v1447_v32, %v611_v27  ;;  %v524_v33 = vpop.f32.mrf.mxu0  ;;  %v554_v35 = vpop.f32.mrf.mxu1 }
  0xbb   : > { %1257 = vst [vmem:[%s1469_s9 + $0x38] sm:$0xff] %v1169_v25   ;;  %v525_v44 = vadd.f32 %v1447_v32, %v524_v33  ;;  %v555_v45 = vadd.f32 %v1447_v32, %v554_v35 }
  0xbc   : > { %vm661_vm0 = vcmp.ge.f32.partialorder %v582_v30, 0.0  ;;  %v713_v36 = vmul.f32 %v1453_v34, %v582_v30  ;;  %vm673_vm1 = vcmp.ge.f32.partialorder %v612_v31, 0.0  ;;  %v725_v37 = vmul.f32 %v1453_v34, %v612_v31 }
  0xbd   : > { %v690_v50 = vmul.f32 %v1453_v34, %v525_v44  ;;  %v702_v51 = vmul.f32 %v1453_v34, %v555_v45  ;;  %vm638_vm2 = vcmp.ge.f32.partialorder %v525_v44, 0.0  ;;  %vm650_vm3 = vcmp.ge.f32.partialorder %v555_v45, 0.0 }
  0xbe   : > { %v761_v40 = vsel %vm661_vm0, %v582_v30, %v713_v36  ;;  %v773_v41 = vsel %vm673_vm1, %v612_v31, %v725_v37 }
  0xbf   : > { %v1199_v42 = vpack.c.bf16 %v761_v40, %v760_v38  ;;  %v1229_v43 = vpack.c.bf16 %v773_v41, %v772_v39  ;;  %v738_v58 = vsel %vm638_vm2, %v525_v44, %v690_v50  ;;  %v750_v59 = vsel %vm650_vm3, %v555_v45, %v702_v51 }
  0xc1   : > { %1263 = vst [vmem:[%s1469_s9 + $0x68] sm:$0xff] %v1199_v42   ;;  %v584_v46 = vpop.f32.mrf.mxu2  ;;  %v614_v47 = vpop.f32.mrf.mxu3 }
  0xc2   : > { %1269 = vst [vmem:[%s1469_s9 + $0x98] sm:$0xff] %v1229_v43   ;;  %v526_v48 = vpop.f32.mrf.mxu0  ;;  %v556_v49 = vpop.f32.mrf.mxu1  ;;  %v585_v56 = vadd.f32 %v1447_v32, %v584_v46  ;;  %v615_v57 = vadd.f32 %v1447_v32, %v614_v47 }
  0xc3   : > { %v527_v52 = vadd.f32 %v1447_v32, %v526_v48  ;;  %v557_v53 = vadd.f32 %v1447_v32, %v556_v49 }
  0xc4   : > { %v714_v2 = vmul.f32 %v1453_v34, %v585_v56  ;;  %v726_v3 = vmul.f32 %v1453_v34, %v615_v57  ;;  %vm662_vm6 = vcmp.ge.f32.partialorder %v585_v56, 0.0  ;;  %vm674_vm7 = vcmp.ge.f32.partialorder %v615_v57, 0.0 }
  0xc5   : > { %vm639_vm4 = vcmp.ge.f32.partialorder %v527_v52, 0.0  ;;  %v691_v54 = vmul.f32 %v1453_v34, %v527_v52  ;;  %vm651_vm5 = vcmp.ge.f32.partialorder %v557_v53, 0.0  ;;  %v703_v55 = vmul.f32 %v1453_v34, %v557_v53 }
  0xc6   : > { %v762_v10 = vsel %vm662_vm6, %v585_v56, %v714_v2  ;;  %v774_v11 = vsel %vm674_vm7, %v615_v57, %v726_v3 }
  0xc7   : > { %v739_v60 = vsel %vm639_vm4, %v527_v52, %v691_v54  ;;  %v751_v61 = vsel %vm651_vm5, %v557_v53, %v703_v55 }
  0xc8   : > { %v1144_v62 = vpack.c.bf16 %v739_v60, %v738_v58  ;;  %v1174_v63 = vpack.c.bf16 %v751_v61, %v750_v59 }
  0xc9   : > { %v586_v0 = vpop.f32.mrf.mxu2  ;;  %v616_v1 = vpop.f32.mrf.mxu3 }
  0xca   : > { %1252 = vst [vmem:[%s1469_s9 + $0x10] sm:$0xff] %v1144_v62   ;;  %v587_v4 = vadd.f32 %v1447_v32, %v586_v0  ;;  %v617_v5 = vadd.f32 %v1447_v32, %v616_v1  ;;  %v529_v6 = vpop.f32.mrf.mxu0  ;;  %v559_v7 = vpop.f32.mrf.mxu1 }
  0xcb   : > { %1258 = vst [vmem:[%s1469_s9 + $0x40] sm:$0xff] %v1174_v63   ;;  %v530_v16 = vadd.f32 %v1447_v32, %v529_v6  ;;  %v560_v17 = vadd.f32 %v1447_v32, %v559_v7 }
  0xcc   : > { %vm663_vm8 = vcmp.ge.f32.partialorder %v587_v4, 0.0  ;;  %v715_v8 = vmul.f32 %v1453_v34, %v587_v4  ;;  %vm675_vm9 = vcmp.ge.f32.partialorder %v617_v5, 0.0  ;;  %v727_v9 = vmul.f32 %v1453_v34, %v617_v5 }
  0xcd   : > { %v692_v22 = vmul.f32 %v1453_v34, %v530_v16  ;;  %v704_v23 = vmul.f32 %v1453_v34, %v560_v17  ;;  %vm640_vm10 = vcmp.ge.f32.partialorder %v530_v16, 0.0  ;;  %vm652_vm11 = vcmp.ge.f32.partialorder %v560_v17, 0.0 }
  0xce   : > { %v763_v12 = vsel %vm663_vm8, %v587_v4, %v715_v8  ;;  %v775_v13 = vsel %vm675_vm9, %v617_v5, %v727_v9 }
  0xcf   : > { %v1204_v14 = vpack.c.bf16 %v763_v12, %v762_v10  ;;  %v1234_v15 = vpack.c.bf16 %v775_v13, %v774_v11  ;;  %v740_v30 = vsel %vm640_vm10, %v530_v16, %v692_v22  ;;  %v752_v31 = vsel %vm652_vm11, %v560_v17, %v704_v23 }
  0xd1   : > { %1264 = vst [vmem:[%s1469_s9 + $0x70] sm:$0xff] %v1204_v14   ;;  %v589_v18 = vpop.f32.mrf.mxu2  ;;  %v619_v19 = vpop.f32.mrf.mxu3 }
  0xd2   : > { %1270 = vst [vmem:[%s1469_s9 + $0xa0] sm:$0xff] %v1234_v15   ;;  %v531_v20 = vpop.f32.mrf.mxu0  ;;  %v561_v21 = vpop.f32.mrf.mxu1  ;;  %v590_v28 = vadd.f32 %v1447_v32, %v589_v18  ;;  %v620_v29 = vadd.f32 %v1447_v32, %v619_v19 }
  0xd3   : > { %v532_v24 = vadd.f32 %v1447_v32, %v531_v20  ;;  %v562_v25 = vadd.f32 %v1447_v32, %v561_v21 }
  0xd4   : > { %v716_v40 = vmul.f32 %v1453_v34, %v590_v28  ;;  %v728_v41 = vmul.f32 %v1453_v34, %v620_v29  ;;  %vm664_vm14 = vcmp.ge.f32.partialorder %v590_v28, 0.0  ;;  %vm676_vm15 = vcmp.ge.f32.partialorder %v620_v29, 0.0 }
  0xd5   : > { %vm641_vm12 = vcmp.ge.f32.partialorder %v532_v24, 0.0  ;;  %v693_v26 = vmul.f32 %v1453_v34, %v532_v24  ;;  %vm653_vm13 = vcmp.ge.f32.partialorder %v562_v25, 0.0  ;;  %v705_v27 = vmul.f32 %v1453_v34, %v562_v25 }
  0xd6   : > { %v764_v48 = vsel %vm664_vm14, %v590_v28, %v716_v40  ;;  %v776_v49 = vsel %vm676_vm15, %v620_v29, %v728_v41 }
  0xd7   : > { %v741_v33 = vsel %vm641_vm12, %v532_v24, %v693_v26  ;;  %v753_v35 = vsel %vm653_vm13, %v562_v25, %v705_v27 }
  0xd8   : > { %v1149_v36 = vpack.c.bf16 %v741_v33, %v740_v30  ;;  %v1179_v37 = vpack.c.bf16 %v753_v35, %v752_v31 }
  0xd9   : > { %v591_v38 = vpop.f32.mrf.mxu2  ;;  %v621_v39 = vpop.f32.mrf.mxu3 }
  0xda   : > { %1253 = vst [vmem:[%s1469_s9 + $0x18] sm:$0xff] %v1149_v36   ;;  %v592_v42 = vadd.f32 %v1447_v32, %v591_v38  ;;  %v622_v43 = vadd.f32 %v1447_v32, %v621_v39  ;;  %v534_v44 = vpop.f32.mrf.mxu0  ;;  %v564_v45 = vpop.f32.mrf.mxu1 }
  0xdb   : > { %1259 = vst [vmem:[%s1469_s9 + $0x48] sm:$0xff] %v1179_v37   ;;  %v535_v54 = vadd.f32 %v1447_v32, %v534_v44  ;;  %v565_v55 = vadd.f32 %v1447_v32, %v564_v45 }
  0xdc   : > { %vm665_vm0 = vcmp.ge.f32.partialorder %v592_v42, 0.0  ;;  %v717_v46 = vmul.f32 %v1453_v34, %v592_v42  ;;  %vm677_vm1 = vcmp.ge.f32.partialorder %v622_v43, 0.0  ;;  %v729_v47 = vmul.f32 %v1453_v34, %v622_v43 }
  0xdd   : > { %v694_v60 = vmul.f32 %v1453_v34, %v535_v54  ;;  %v706_v61 = vmul.f32 %v1453_v34, %v565_v55  ;;  %vm642_vm2 = vcmp.ge.f32.partialorder %v535_v54, 0.0  ;;  %vm654_vm3 = vcmp.ge.f32.partialorder %v565_v55, 0.0 }
  0xde   : > { %v765_v50 = vsel %vm665_vm0, %v592_v42, %v717_v46  ;;  %v777_v51 = vsel %vm677_vm1, %v622_v43, %v729_v47 }
  0xdf   : > { %v1209_v52 = vpack.c.bf16 %v765_v50, %v764_v48  ;;  %v1239_v53 = vpack.c.bf16 %v777_v51, %v776_v49  ;;  %v742_v4 = vsel %vm642_vm2, %v535_v54, %v694_v60  ;;  %v754_v5 = vsel %vm654_vm3, %v565_v55, %v706_v61 }
  0xe1   : > { %1265 = vst [vmem:[%s1469_s9 + $0x78] sm:$0xff] %v1209_v52   ;;  %v594_v56 = vpop.f32.mrf.mxu2  ;;  %v624_v57 = vpop.f32.mrf.mxu3 }
  0xe2   : > { %1271 = vst [vmem:[%s1469_s9 + $0xa8] sm:$0xff] %v1239_v53   ;;  %v536_v58 = vpop.f32.mrf.mxu0  ;;  %v566_v59 = vpop.f32.mrf.mxu1  ;;  %v595_v2 = vadd.f32 %v1447_v32, %v594_v56  ;;  %v625_v3 = vadd.f32 %v1447_v32, %v624_v57 }
  0xe3   : > { %v537_v62 = vadd.f32 %v1447_v32, %v536_v58  ;;  %v567_v63 = vadd.f32 %v1447_v32, %v566_v59 }
  0xe4   : > { %v718_v12 = vmul.f32 %v1453_v34, %v595_v2  ;;  %v730_v13 = vmul.f32 %v1453_v34, %v625_v3  ;;  %vm666_vm6 = vcmp.ge.f32.partialorder %v595_v2, 0.0  ;;  %vm678_vm7 = vcmp.ge.f32.partialorder %v625_v3, 0.0 }
  0xe5   : > { %vm643_vm4 = vcmp.ge.f32.partialorder %v537_v62, 0.0  ;;  %v695_v0 = vmul.f32 %v1453_v34, %v537_v62  ;;  %vm655_vm5 = vcmp.ge.f32.partialorder %v567_v63, 0.0  ;;  %v707_v1 = vmul.f32 %v1453_v34, %v567_v63 }
  0xe6   : > { %v766_v20 = vsel %vm666_vm6, %v595_v2, %v718_v12  ;;  %v778_v21 = vsel %vm678_vm7, %v625_v3, %v730_v13 }
  0xe7   : > { %v743_v6 = vsel %vm643_vm4, %v537_v62, %v695_v0  ;;  %v755_v7 = vsel %vm655_vm5, %v567_v63, %v707_v1 }
  0xe8   : > { %v1154_v8 = vpack.c.bf16 %v743_v6, %v742_v4  ;;  %v1184_v9 = vpack.c.bf16 %v755_v7, %v754_v5 }
  0xe9   : > { %v596_v10 = vpop.f32.mrf.mxu2  ;;  %v626_v11 = vpop.f32.mrf.mxu3 }
  0xea   : > { %1254 = vst [vmem:[%s1469_s9 + $0x20] sm:$0xff] %v1154_v8   ;;  %v597_v14 = vadd.f32 %v1447_v32, %v596_v10  ;;  %v627_v15 = vadd.f32 %v1447_v32, %v626_v11  ;;  %v539_v16 = vpop.f32.mrf.mxu0  ;;  %v569_v17 = vpop.f32.mrf.mxu1 }
  0xeb   : > { %1260 = vst [vmem:[%s1469_s9 + $0x50] sm:$0xff] %v1184_v9   ;;  %v540_v26 = vadd.f32 %v1447_v32, %v539_v16  ;;  %v570_v27 = vadd.f32 %v1447_v32, %v569_v17 }
  0xec   : > { %vm667_vm8 = vcmp.ge.f32.partialorder %v597_v14, 0.0  ;;  %v719_v18 = vmul.f32 %v1453_v34, %v597_v14  ;;  %vm679_vm9 = vcmp.ge.f32.partialorder %v627_v15, 0.0  ;;  %v731_v19 = vmul.f32 %v1453_v34, %v627_v15 }
  0xed   : > { %v696_v33 = vmul.f32 %v1453_v34, %v540_v26  ;;  %v708_v35 = vmul.f32 %v1453_v34, %v570_v27  ;;  %vm644_vm10 = vcmp.ge.f32.partialorder %v540_v26, 0.0  ;;  %vm656_vm11 = vcmp.ge.f32.partialorder %v570_v27, 0.0 }
  0xee   : > { %v767_v22 = vsel %vm667_vm8, %v597_v14, %v719_v18  ;;  %v779_v23 = vsel %vm679_vm9, %v627_v15, %v731_v19 }
  0xef   : > { %v1214_v24 = vpack.c.bf16 %v767_v22, %v766_v20  ;;  %v1244_v25 = vpack.c.bf16 %v779_v23, %v778_v21  ;;  %v744_v42 = vsel %vm644_vm10, %v540_v26, %v696_v33  ;;  %v756_v43 = vsel %vm656_vm11, %v570_v27, %v708_v35 }
  0xf1   : > { %1266 = vst [vmem:[%s1469_s9 + $0x80] sm:$0xff] %v1214_v24   ;;  %v599_v28 = vpop.f32.mrf.mxu2  ;;  %v629_v29 = vpop.f32.mrf.mxu3 }
  0xf2   : > { %1272 = vst [vmem:[%s1469_s9 + $0xb0] sm:$0xff] %v1244_v25   ;;  %v541_v30 = vpop.f32.mrf.mxu0  ;;  %v571_v31 = vpop.f32.mrf.mxu1  ;;  %v600_v40 = vadd.f32 %v1447_v32, %v599_v28  ;;  %v630_v41 = vadd.f32 %v1447_v32, %v629_v29 }
  0xf3   : > { %v542_v36 = vadd.f32 %v1447_v32, %v541_v30  ;;  %v572_v37 = vadd.f32 %v1447_v32, %v571_v31 }
  0xf4   : > { %v720_v50 = vmul.f32 %v1453_v34, %v600_v40  ;;  %v732_v51 = vmul.f32 %v1453_v34, %v630_v41  ;;  %vm668_vm14 = vcmp.ge.f32.partialorder %v600_v40, 0.0  ;;  %vm680_vm15 = vcmp.ge.f32.partialorder %v630_v41, 0.0 }
  0xf5   : > { %vm645_vm12 = vcmp.ge.f32.partialorder %v542_v36, 0.0  ;;  %v697_v38 = vmul.f32 %v1453_v34, %v542_v36  ;;  %vm657_vm13 = vcmp.ge.f32.partialorder %v572_v37, 0.0  ;;  %v709_v39 = vmul.f32 %v1453_v34, %v572_v37 }
  0xf6   : > { %v768_v56 = vsel %vm668_vm14, %v600_v40, %v720_v50  ;;  %v780_v57 = vsel %vm680_vm15, %v630_v41, %v732_v51 }
  0xf7   : > { %v745_v44 = vsel %vm645_vm12, %v542_v36, %v697_v38  ;;  %v757_v45 = vsel %vm657_vm13, %v572_v37, %v709_v39 }
  0xf8   : > { %v1159_v46 = vpack.c.bf16 %v745_v44, %v744_v42  ;;  %v1189_v47 = vpack.c.bf16 %v757_v45, %v756_v43 }
  0xf9   : > { %v601_v48 = vpop.f32.mrf.mxu2  ;;  %v631_v49 = vpop.f32.mrf.mxu3 }
  0xfa   : > { %1255 = vst [vmem:[%s1469_s9 + $0x28] sm:$0xff] %v1159_v46   ;;  %v602_v52 = vadd.f32 %v1447_v32, %v601_v48  ;;  %v632_v53 = vadd.f32 %v1447_v32, %v631_v49 }
  0xfb   : > { %1261 = vst [vmem:[%s1469_s9 + $0x58] sm:$0xff] %v1189_v47  }
  0xfc   : > { %vm669_vm0 = vcmp.ge.f32.partialorder %v602_v52, 0.0  ;;  %v721_v54 = vmul.f32 %v1453_v34, %v602_v52  ;;  %vm681_vm1 = vcmp.ge.f32.partialorder %v632_v53, 0.0  ;;  %v733_v55 = vmul.f32 %v1453_v34, %v632_v53 }
  0xfe   : > { %v769_v58 = vsel %vm669_vm0, %v602_v52, %v721_v54  ;;  %v781_v59 = vsel %vm681_vm1, %v632_v53, %v733_v55 }
  0xff   : > { %v1219_v60 = vpack.c.bf16 %v769_v58, %v768_v56  ;;  %v1249_v61 = vpack.c.bf16 %v781_v59, %v780_v57 }
 0x101   : > { %1267 = vst [vmem:[%s1469_s9 + $0x88] sm:$0xff] %v1219_v60  }
 0x102   : > { %1273 = vst [vmem:[%s1469_s9 + $0xb8] sm:$0xff] %v1249_v61  }
 0x103 PF: > { %s14_s17 = sadd.s32 1, %s1332_s17   ;;  %s1595_s15 = smov %s1328_s16 }
 0x104   : > { %p11_p5 = scmp.ge.s32.totalorder %s14_s17, 4   ;;  %s1596_s16 = smov %s1598_s18 }
 0x106   :  { %13 = sbr.rel (!%p11_p5) target bundleno = 2 (0x2), region = 66 }

</bundles_post_ra>
